<compile_context>
chip_gen: v7x
topology: tpu7x:2x2x1
jax: 0.10.0
libtpu: 0.0.40
codegen_flags: <defaults>
</compile_context>

<pallas_src>
import jax
import jax.numpy as jnp
from jax.experimental import pallas as pl
from jax.experimental.pallas import tpu as pltpu


_LANE = 128            # TPU vreg lane width
_MAX_LANES = 1024      # lane-dense cap: 4 KiB per f32 row
_MAX_TILE_ROWS = 512   # 512 x 1024 f32 = 2 MiB per block
_TINY = 8 * 128        # below this, pallas launch overhead dominates the copy


def _copy_kernel(x_ref, o_ref):
    # A squeeze that must materialize a fresh buffer is just a tile copy.
    o_ref[...] = x_ref[...]


def _lane_dense_2d(n: int, fallback_last: int):
    """Factor n into (rows, lanes) with lanes a multiple of 128 when possible,
    so the output slab uses full vreg lanes (unmasked stores)."""
    if n % _LANE == 0:
        lanes = _LANE
        for cand in (_MAX_LANES, 512, 256):
            if n % cand == 0:
                lanes = cand
                break
        return n // lanes, lanes
    # No 128-friendly factorization: fall back to the natural last dim
    # (block last dim == full array last dim, which Mosaic accepts).
    fallback_last = max(int(fallback_last), 1)
    return n // fallback_last, fallback_last


def _pick_tile_rows(rows: int) -> int:
    """Largest row tile <= _MAX_TILE_ROWS; prefer an exact divisor that is a
    multiple of 8 so every grid step stores a full, unmasked block."""
    if rows <= _MAX_TILE_ROWS:
        return rows
    for cand in range(_MAX_TILE_ROWS, 7, -8):
        if rows % cand == 0:
            return cand
    return _MAX_TILE_ROWS  # masked tail block (rare)


def _squeeze_copy_pallas(x: jax.Array, squeezed_shape) -> jax.Array:
    """Materializing squeeze: tiled, lane-dense, pipelined copy kernel into a
    fresh HBM buffer."""
    n = x.size
    last = squeezed_shape[-1] if len(squeezed_shape) else 1
    rows, lanes = _lane_dense_2d(n, last)
    x2 = x.reshape(rows, lanes)

    tile_rows = _pick_tile_rows(rows)
    grid = (pl.cdiv(rows, tile_rows),)

    out2 = pl.pallas_call(
        _copy_kernel,
        out_shape=jax.ShapeDtypeStruct((rows, lanes), x.dtype),
        grid=grid,
        in_specs=[pl.BlockSpec((tile_rows, lanes), lambda i: (i, 0))],
        out_specs=pl.BlockSpec((tile_rows, lanes), lambda i: (i, 0)),
        compiler_params=pltpu.CompilerParams(
            dimension_semantics=("parallel",),
        ),
    )(x2)
    return out2.reshape(squeezed_shape)


def squeeze_pallas(x: jax.Array, *, materialize: bool = False) -> jax.Array:
    """Equivalent of torch.squeeze(x): drop every dimension of size 1.

    Default path is a metadata-only reshape (zero data movement), matching
    torch's view semantics.  Set `materialize=True` only if a freshly
    materialized buffer is required; tiny inputs still bypass the kernel
    because launch overhead dwarfs the copy.
    """
    squeezed_shape = tuple(int(d) for d in x.shape if d != 1)
    if not materialize or x.size < _TINY:
        return x.reshape(squeezed_shape)
    return _squeeze_copy_pallas(x, squeezed_shape)


if __name__ == "__main__":
    key = jax.random.PRNGKey(0)
    k1, k2, k3 = jax.random.split(key, 3)

    # 1) Module-consistent tiny input: rank-4 f32 with a size-1 trailing dim.
    #    Uses the metadata-only path (highest-value optimization: no copy).
    x_small = jax.random.normal(k1, (2, 4, 16, 1), dtype=jnp.float32)
    ref_small = jnp.squeeze(x_small)
    y_small = jax.block_until_ready(squeeze_pallas(x_small))
    assert y_small.shape == ref_small.shape == (2, 4, 16), (y_small.shape,)
    assert y_small.dtype == jnp.float32
    assert jnp.array_equal(y_small, ref_small)

    # 2) Materializing path: lane-dense (lanes=1024) tiled copy; tile_rows is
    #    chosen as an exact divisor (200) of rows=600 -> 3 full unmasked blocks.
    x_med = jax.random.normal(k2, (2, 1, 600, 512), dtype=jnp.float32)
    ref_med = jnp.squeeze(x_med)
    y_med = jax.block_until_ready(squeeze_pallas(x_med, materialize=True))
    assert y_med.shape == ref_med.shape == (2, 600, 512), (y_med.shape,)
    assert jnp.array_equal(y_med, ref_med)

    # 3) Materializing path, non-128-divisible fallback layout
    #    (single full-extent block, last dim == array last dim).
    x_odd = jax.random.normal(k3, (4, 1, 33, 48), dtype=jnp.float32)
    ref_odd = jnp.squeeze(x_odd)
    y_odd = jax.block_until_ready(squeeze_pallas(x_odd, materialize=True))
    assert y_odd.shape == ref_odd.shape == (4, 33, 48), (y_odd.shape,)
    assert jnp.array_equal(y_odd, ref_odd)

    print("KERNEL_OK")
</pallas_src>

<mosaic_0001>
module attributes {stable_mosaic.version = 11 : i64} {
  func.func @_copy_kernel(%arg0: i32, %arg1: memref<200x1024xf32, #tpu.memory_space<vmem>>, %arg2: memref<200x1024xf32, #tpu.memory_space<vmem>>) attributes {dimension_semantics = [#tpu.dimension_semantics<parallel>], iteration_bounds = array<i64: 3>, scalar_prefetch = 0 : i64, scratch_operands = 0 : i64, tpu.core_type = #tpu.core_type<tc>, window_params = [{transform_indices = @transform_0, window_bounds = array<i64: 200, 1024>}, {transform_indices = @transform_1, window_bounds = array<i64: 200, 1024>}]} {
    %c0 = arith.constant 0 : index
    %c0_0 = arith.constant 0 : index
    %0 = vector.load %arg1[%c0, %c0_0] : memref<200x1024xf32, #tpu.memory_space<vmem>>, vector<200x1024xf32>
    %c0_1 = arith.constant 0 : index
    %c0_2 = arith.constant 0 : index
    %1 = vector.load %arg2[%c0_1, %c0_2] : memref<200x1024xf32, #tpu.memory_space<vmem>>, vector<200x1024xf32>
    tpu.vector_store %arg2[%c0_1, %c0_2], %0 {strides = array<i32>} : memref<200x1024xf32, #tpu.memory_space<vmem>>, vector<200x1024xf32>,
    return
  }
  func.func @transform_0(%arg0: i32) -> (i32, i32) {
    %c0_i32 = arith.constant 0 : i32
    %c0_i32_0 = arith.constant 0 : i32
    return %arg0, %c0_i32 : i32, i32
  }
  func.func @transform_1(%arg0: i32) -> (i32, i32) {
    %c0_i32 = arith.constant 0 : i32
    %c0_i32_0 = arith.constant 0 : i32
    return %arg0, %c0_i32 : i32, i32
  }
}

</mosaic_0001>

<bundles_post_ra>
// kernel: tpu_custom_call.1
= control target key start
LH: loop header
LB: loop body
LE: loop exit
PB: predicated region body
PF: predicated region fallthrough
CT: control target
= control target key end

     0   :  { %6 = vsyncpa [#allocation3], 0  ;;  %s1367_s0 = inlined_call_operand.hbm [shape: f32[600,1024], index: 0, kind: input, shape index: {}]   ;;  %s1368_s1 = inlined_call_operand.hbm [shape: f32[600,1024], index: 1, kind: output, shape index: {}]  }
   0x1   :  { %8 = vsyncpa [#allocation3 + $0x1], 0 }
   0x2   :  { %9 = vsyncpa [#allocation4], 0 }
   0x3   :  { %11 = vsyncpa [#allocation4 + $0x1], 0  ;;  %s808_s6 = smov 0   ;;  %s810_s7 = smov 0  }
   0x4   :  { %s812_s8 = smov 0   ;;  %s814_s9 = smov 0  }
   0x5 LB: > { %s829_s10 = sadd.s32 4294967295, %s790_s9   ;;  %s626_s11 = sadd.s32 4294967294, %s790_s9   ;;  %s790_s9 = sphi %s814_s9, %s1379_s9   ;;  %s786_s8 = sphi %s812_s8, %s1378_s8   ;;  %s782_s7 = sphi %s810_s7, %s1377_s7   ;;  %s778_s6 = sphi %s808_s6, %s1376_s6  }
   0x6   : > { %s833_s12 = sadd.s32 1, %s790_s9   ;;  %s24_s13 = sadd.s32 1, %s786_s8 }
   0x7   : > { %s21_s14 = ssub.s32 %s790_s9, %s833_s12  ;;  %p31_p0 = scmp.ne.s32.totalorder %s786_s8, %s782_s7 }
   0x8   : > { %p22_p1 = scmp.eq.s32.totalorder %s21_s14, 0  ;;  %p32_p2 = scmp.eq.s32.totalorder %s790_s9, 0 }
   0x9   : > { %p37_p3 = scmp.ne.s32.totalorder %s782_s7, %s778_s6  ;;  %p38_p4 = scmp.eq.s32.totalorder %s829_s10, 0 }
   0xa   : > { %s845_s15 = scalar_select %p22_p1, %s786_s8, %s24_s13  }
   0xb   : > { %p33_p5 = por %p32_p2, %p31_p0  ;;  %p847_p6 = por %p38_p4, %p37_p3 }
   0xc   : > { %p61_p7 = scmp.eq.s32.totalorder %s829_s10, 2  ;;  %p67_p8 = scmp.eq.s32.totalorder %s626_s11, 2 }
   0xd   : > { %p656_p9 = scmp.lt.s32.totalorder %s790_s9, 3  ;;  %s87_s19 = sand.u32 1, %s786_s8  }
   0xe   : > { %p853_p10 = por %p61_p7, %p31_p0  ;;  %p857_p11 = por %p67_p8, %p37_p3 }
   0xf   : > { %s640_s20 = smul.u32 25600, %s790_s9  ;;  %p868_p12 = pnand %p656_p9, %p33_p5 }
  0x10   : > { %s1371_s17 = scalar_select %p853_p10, 1, 0 }
  0x11   : > { %s1372_s18 = scalar_select %p857_p11, 1, 0 }
  0x12   : > { %s642_s21 = smul.u32 1600, %s87_s19  ;;  %s866_s24 = scalar_lea.hbm %s1367_s0, %s640_s20 }
  0x13   : > { %s874_s28 = scalar_lea.sflag [#allocation3], %s87_s19  ;;  %s694_s29 = scalar_lea.hbm %s866_s24, 25600 }
  0x14   : > { %s91_s26 = scalar_lea.vmem [#allocation2], %s642_s21  ;;  %p695_p13 = scmp.ne.s32.totalorder %s866_s24, %s694_s29 }
  0x15   : > { %s99_s27 = sshll.u32 %s91_s26, 4  ;;  %p696_p0 = pneg %p868_p12  ;;  %s872_s27 = int_to_ptr.vmem [resolvable:$true] %s99_s27 }
  0x16   : > { %s699_s3 = scalar_lea.hbm %s1367_s0, 76800  ;;  %p700_p3 = scmp.lt.u32.totalorder %s866_s24, %s1367_s0 }
  0x17   : > { %p697_p1 = pnand %p696_p0, %p695_p13  ;;  %p701_p4 = scmp.lt.u32.totalorder %s699_s3, %s694_s29 }
  0x18   : > { %p703_p7 = scmp.lt.u32.totalorder %s694_s29, %s866_s24 }
  0x19   : > { %p698_p2 = pneg %p697_p1  ;;  %p702_p5 = por %p701_p4, %p700_p3 }
  0x1b   : > { %p704_p8 = por %p703_p7, %p702_p5 }
  0x1d   : > { %p705_p9 = pnand %p704_p8, %p698_p2 }
  0x1f   : > { %708 = shalt.err (!%p705_p9)
}
  0x20   : > { %s709_s11 = scalar_lea.vmem %s872_s27, 25600  ;;  %s792_s13 = smov [#allocation2]  }
  0x21   : > { %p710_p13 = scmp.ne.s32.totalorder %s872_s27, %s709_s11  ;;  %s714_s14 = sshll.u32 %s792_s13, 4  ;;  %s715_s14 = int_to_ptr.vmem [resolvable:$false] %s714_s14 }
  0x22   : > { %s716_s19 = scalar_lea.vmem %s715_s14, 51200  ;;  %p717_p10 = scmp.lt.s32.totalorder %s872_s27, %s715_s14 }
  0x23   : > { %p712_p1 = pnand %p710_p13, %p696_p0  ;;  %p718_p3 = scmp.lt.s32.totalorder %s716_s19, %s709_s11 }
  0x25   : > { %p713_p11 = pneg %p712_p1  ;;  %p719_p4 = por %p718_p3, %p717_p10 }
  0x27   : > { %p720_p5 = pnand %p719_p4, %p713_p11 }
  0x29   : > { %723 = shalt.err (!%p720_p5)
}
  0x2a   : > { %s793_s20 = smov 1024   ;;  %s794_s21 = smov 64  }
  0x2b   : > { %651 = dma.hbm_to_vmem [thread:$0]  (!%p868_p12), %s866_s24, 25600, %s872_s27, %s874_s28, %s793_s20, %s793_s20, %s794_s21  }
  0x2c   : > { %p631_p0 = scmp.ge.s32.totalorder %s790_s9, 1  ;;  %p107_p2 = scmp.lt.s32.totalorder %s790_s9, 4 }
  0x2e   : > { %p108_p7 = pnand %p631_p0, %p107_p2 }
  0x2f   : > { %s905_s22 = sand.u32 (!%p108_p7), 1, %s782_s7  }
  0x30   : > { %111 = sbr.rel (%p108_p7) target bundleno = 171 (0xab), region = 24  ;;  %s114_s26 = scalar_lea.sflag (!%p108_p7), [#allocation3], %s905_s22 }
  0x31   : > { %s643_s23 = smul.u32 (!%p108_p7), 1600, %s905_s22 }
  0x33   : > { %s909_s29 = scalar_lea.vmem (!%p108_p7), [#allocation2], %s643_s23 }
  0x37   : > { %769 = dma.done.wait (%p847_p6), %s114_s26, 25600  }
  0x38   : > { %771 = vsyncadd (%p847_p6), %s114_s26, 4294941696  ;;  %v138_v0 = vld [vmem:[%s909_s29] sm:$0xff]  ;;  %v139_v1 = vld [vmem:[%s909_s29 + $0x8] sm:$0xff]  ;;  %s918_s24 = scalar_lea.vmem [#allocation5], %s643_s23  ;;  %s641_s16 = smul.u32 25600, %s829_s10 }
  0x39   : > { %v140_v2 = vld [vmem:[%s909_s29 + $0x10] sm:$0xff]  ;;  %338 = vst [vmem:[%s918_s24] sm:$0xff] %v138_v0  ;;  %339 = vst [vmem:[%s918_s24 + $0x8] sm:$0xff] %v139_v1  ;;  %v141_v3 = vld [vmem:[%s909_s29 + $0x18] sm:$0xff]  ;;  %s553_s25 = sshll.u32 %s918_s24, 4  ;;  %s539_s30 = scalar_lea.sflag [#allocation4], %s905_s22  ;;  %s1306_s25 = int_to_ptr.vmem [resolvable:$true] %s553_s25 }
  0x3a   : > { %340 = vst [vmem:[%s918_s24 + $0x10] sm:$0xff] %v140_v2  ;;  %v142_v4 = vld [vmem:[%s909_s29 + $0x20] sm:$0xff]  ;;  %v143_v5 = vld [vmem:[%s909_s29 + $0x28] sm:$0xff]  ;;  %341 = vst [vmem:[%s918_s24 + $0x18] sm:$0xff] %v141_v3  ;;  %s1317_s28 = scalar_lea.hbm %s1368_s1, %s641_s16  ;;  %s724_s2 = scalar_lea.vmem %s1306_s25, 25600 }
  0x3b   : > { %342 = vst [vmem:[%s918_s24 + $0x20] sm:$0xff] %v142_v4  ;;  %343 = vst [vmem:[%s918_s24 + $0x28] sm:$0xff] %v143_v5  ;;  %v144_v6 = vld [vmem:[%s909_s29 + $0x30] sm:$0xff]  ;;  %v145_v7 = vld [vmem:[%s909_s29 + $0x38] sm:$0xff]  ;;  %p725_p6 = scmp.ne.s32.totalorder %s1306_s25, %s724_s2  ;;  %p1374_p10 = scmp.ne.s32.totalorder %s1371_s17, 0 }
  0x3c   : > { %v146_v8 = vld [vmem:[%s909_s29 + $0x40] sm:$0xff]  ;;  %344 = vst [vmem:[%s918_s24 + $0x30] sm:$0xff] %v144_v6  ;;  %345 = vst [vmem:[%s918_s24 + $0x38] sm:$0xff] %v145_v7  ;;  %v147_v9 = vld [vmem:[%s909_s29 + $0x48] sm:$0xff]  ;;  %s795_s3 = smov [#allocation5]  }
  0x3d   : > { %346 = vst [vmem:[%s918_s24 + $0x40] sm:$0xff] %v146_v8  ;;  %v148_v10 = vld [vmem:[%s909_s29 + $0x50] sm:$0xff]  ;;  %v149_v11 = vld [vmem:[%s909_s29 + $0x58] sm:$0xff]  ;;  %347 = vst [vmem:[%s918_s24 + $0x48] sm:$0xff] %v147_v9  ;;  %p726_p11 = pnand %p725_p6, %p1374_p10  ;;  %s728_s4 = sshll.u32 %s795_s3, 4  ;;  %s729_s4 = int_to_ptr.vmem [resolvable:$false] %s728_s4 }
  0x3e   : > { %348 = vst [vmem:[%s918_s24 + $0x50] sm:$0xff] %v148_v10  ;;  %349 = vst [vmem:[%s918_s24 + $0x58] sm:$0xff] %v149_v11  ;;  %v150_v12 = vld [vmem:[%s909_s29 + $0x60] sm:$0xff]  ;;  %v151_v13 = vld [vmem:[%s909_s29 + $0x68] sm:$0xff]  ;;  %s730_s5 = scalar_lea.vmem %s729_s4, 51200  ;;  %p731_p8 = scmp.lt.s32.totalorder %s1306_s25, %s729_s4 }
  0x3f   : > { %v152_v14 = vld [vmem:[%s909_s29 + $0x70] sm:$0xff]  ;;  %350 = vst [vmem:[%s918_s24 + $0x60] sm:$0xff] %v150_v12  ;;  %351 = vst [vmem:[%s918_s24 + $0x68] sm:$0xff] %v151_v13  ;;  %v153_v15 = vld [vmem:[%s909_s29 + $0x78] sm:$0xff]  ;;  %p727_p12 = pneg %p726_p11  ;;  %p732_p9 = scmp.lt.s32.totalorder %s730_s5, %s724_s2 }
  0x40   : > { %352 = vst [vmem:[%s918_s24 + $0x70] sm:$0xff] %v152_v14  ;;  %v154_v16 = vld [vmem:[%s909_s29 + $0x80] sm:$0xff]  ;;  %v155_v17 = vld [vmem:[%s909_s29 + $0x88] sm:$0xff]  ;;  %353 = vst [vmem:[%s918_s24 + $0x78] sm:$0xff] %v153_v15 }
  0x41   : > { %354 = vst [vmem:[%s918_s24 + $0x80] sm:$0xff] %v154_v16  ;;  %355 = vst [vmem:[%s918_s24 + $0x88] sm:$0xff] %v155_v17  ;;  %v156_v18 = vld [vmem:[%s909_s29 + $0x90] sm:$0xff]  ;;  %v157_v19 = vld [vmem:[%s909_s29 + $0x98] sm:$0xff]  ;;  %p733_p13 = por %p732_p9, %p731_p8 }
  0x42   : > { %v158_v20 = vld [vmem:[%s909_s29 + $0xa0] sm:$0xff]  ;;  %356 = vst [vmem:[%s918_s24 + $0x90] sm:$0xff] %v156_v18  ;;  %357 = vst [vmem:[%s918_s24 + $0x98] sm:$0xff] %v157_v19  ;;  %v159_v21 = vld [vmem:[%s909_s29 + $0xa8] sm:$0xff] }
  0x43   : > { %358 = vst [vmem:[%s918_s24 + $0xa0] sm:$0xff] %v158_v20  ;;  %v160_v22 = vld [vmem:[%s909_s29 + $0xb0] sm:$0xff]  ;;  %v161_v23 = vld [vmem:[%s909_s29 + $0xb8] sm:$0xff]  ;;  %359 = vst [vmem:[%s918_s24 + $0xa8] sm:$0xff] %v159_v21  ;;  %p734_p1 = pnand %p733_p13, %p727_p12 }
  0x44   : > { %360 = vst [vmem:[%s918_s24 + $0xb0] sm:$0xff] %v160_v22  ;;  %361 = vst [vmem:[%s918_s24 + $0xb8] sm:$0xff] %v161_v23  ;;  %v162_v24 = vld [vmem:[%s909_s29 + $0xc0] sm:$0xff]  ;;  %v163_v25 = vld [vmem:[%s909_s29 + $0xc8] sm:$0xff] }
  0x45   : > { %v164_v26 = vld [vmem:[%s909_s29 + $0xd0] sm:$0xff]  ;;  %362 = vst [vmem:[%s918_s24 + $0xc0] sm:$0xff] %v162_v24  ;;  %363 = vst [vmem:[%s918_s24 + $0xc8] sm:$0xff] %v163_v25  ;;  %v165_v27 = vld [vmem:[%s909_s29 + $0xd8] sm:$0xff] }
  0x46   : > { %364 = vst [vmem:[%s918_s24 + $0xd0] sm:$0xff] %v164_v26  ;;  %v166_v28 = vld [vmem:[%s909_s29 + $0xe0] sm:$0xff]  ;;  %v167_v29 = vld [vmem:[%s909_s29 + $0xe8] sm:$0xff]  ;;  %365 = vst [vmem:[%s918_s24 + $0xd8] sm:$0xff] %v165_v27 }
  0x47   : > { %366 = vst [vmem:[%s918_s24 + $0xe0] sm:$0xff] %v166_v28  ;;  %367 = vst [vmem:[%s918_s24 + $0xe8] sm:$0xff] %v167_v29  ;;  %v168_v30 = vld [vmem:[%s909_s29 + $0xf0] sm:$0xff]  ;;  %v169_v31 = vld [vmem:[%s909_s29 + $0xf8] sm:$0xff] }
  0x48   : > { %v170_v32 = vld [vmem:[%s909_s29 + $0x100] sm:$0xff]  ;;  %368 = vst [vmem:[%s918_s24 + $0xf0] sm:$0xff] %v168_v30  ;;  %369 = vst [vmem:[%s918_s24 + $0xf8] sm:$0xff] %v169_v31  ;;  %v171_v33 = vld [vmem:[%s909_s29 + $0x108] sm:$0xff] }
  0x49   : > { %370 = vst [vmem:[%s918_s24 + $0x100] sm:$0xff] %v170_v32  ;;  %v172_v34 = vld [vmem:[%s909_s29 + $0x110] sm:$0xff]  ;;  %v173_v35 = vld [vmem:[%s909_s29 + $0x118] sm:$0xff]  ;;  %371 = vst [vmem:[%s918_s24 + $0x108] sm:$0xff] %v171_v33 }
  0x4a   : > { %372 = vst [vmem:[%s918_s24 + $0x110] sm:$0xff] %v172_v34  ;;  %373 = vst [vmem:[%s918_s24 + $0x118] sm:$0xff] %v173_v35  ;;  %v174_v36 = vld [vmem:[%s909_s29 + $0x120] sm:$0xff]  ;;  %v175_v37 = vld [vmem:[%s909_s29 + $0x128] sm:$0xff] }
  0x4b   : > { %v176_v38 = vld [vmem:[%s909_s29 + $0x130] sm:$0xff]  ;;  %374 = vst [vmem:[%s918_s24 + $0x120] sm:$0xff] %v174_v36  ;;  %375 = vst [vmem:[%s918_s24 + $0x128] sm:$0xff] %v175_v37  ;;  %v177_v39 = vld [vmem:[%s909_s29 + $0x138] sm:$0xff] }
  0x4c   : > { %376 = vst [vmem:[%s918_s24 + $0x130] sm:$0xff] %v176_v38  ;;  %v178_v40 = vld [vmem:[%s909_s29 + $0x140] sm:$0xff]  ;;  %v179_v41 = vld [vmem:[%s909_s29 + $0x148] sm:$0xff]  ;;  %377 = vst [vmem:[%s918_s24 + $0x138] sm:$0xff] %v177_v39 }
  0x4d   : > { %378 = vst [vmem:[%s918_s24 + $0x140] sm:$0xff] %v178_v40  ;;  %379 = vst [vmem:[%s918_s24 + $0x148] sm:$0xff] %v179_v41  ;;  %v180_v42 = vld [vmem:[%s909_s29 + $0x150] sm:$0xff]  ;;  %v181_v43 = vld [vmem:[%s909_s29 + $0x158] sm:$0xff] }
  0x4e   : > { %v182_v44 = vld [vmem:[%s909_s29 + $0x160] sm:$0xff]  ;;  %380 = vst [vmem:[%s918_s24 + $0x150] sm:$0xff] %v180_v42  ;;  %381 = vst [vmem:[%s918_s24 + $0x158] sm:$0xff] %v181_v43  ;;  %v183_v45 = vld [vmem:[%s909_s29 + $0x168] sm:$0xff] }
  0x4f   : > { %382 = vst [vmem:[%s918_s24 + $0x160] sm:$0xff] %v182_v44  ;;  %v184_v46 = vld [vmem:[%s909_s29 + $0x170] sm:$0xff]  ;;  %v185_v47 = vld [vmem:[%s909_s29 + $0x178] sm:$0xff]  ;;  %383 = vst [vmem:[%s918_s24 + $0x168] sm:$0xff] %v183_v45 }
  0x50   : > { %384 = vst [vmem:[%s918_s24 + $0x170] sm:$0xff] %v184_v46  ;;  %385 = vst [vmem:[%s918_s24 + $0x178] sm:$0xff] %v185_v47  ;;  %v186_v48 = vld [vmem:[%s909_s29 + $0x180] sm:$0xff]  ;;  %v187_v49 = vld [vmem:[%s909_s29 + $0x188] sm:$0xff] }
  0x51   : > { %v188_v50 = vld [vmem:[%s909_s29 + $0x190] sm:$0xff]  ;;  %386 = vst [vmem:[%s918_s24 + $0x180] sm:$0xff] %v186_v48  ;;  %387 = vst [vmem:[%s918_s24 + $0x188] sm:$0xff] %v187_v49  ;;  %v189_v51 = vld [vmem:[%s909_s29 + $0x198] sm:$0xff] }
  0x52   : > { %388 = vst [vmem:[%s918_s24 + $0x190] sm:$0xff] %v188_v50  ;;  %v190_v52 = vld [vmem:[%s909_s29 + $0x1a0] sm:$0xff]  ;;  %v191_v53 = vld [vmem:[%s909_s29 + $0x1a8] sm:$0xff]  ;;  %389 = vst [vmem:[%s918_s24 + $0x198] sm:$0xff] %v189_v51 }
  0x53   : > { %390 = vst [vmem:[%s918_s24 + $0x1a0] sm:$0xff] %v190_v52  ;;  %391 = vst [vmem:[%s918_s24 + $0x1a8] sm:$0xff] %v191_v53  ;;  %v192_v54 = vld [vmem:[%s909_s29 + $0x1b0] sm:$0xff]  ;;  %v193_v55 = vld [vmem:[%s909_s29 + $0x1b8] sm:$0xff] }
  0x54   : > { %v194_v56 = vld [vmem:[%s909_s29 + $0x1c0] sm:$0xff]  ;;  %392 = vst [vmem:[%s918_s24 + $0x1b0] sm:$0xff] %v192_v54  ;;  %393 = vst [vmem:[%s918_s24 + $0x1b8] sm:$0xff] %v193_v55  ;;  %v195_v57 = vld [vmem:[%s909_s29 + $0x1c8] sm:$0xff] }
  0x55   : > { %394 = vst [vmem:[%s918_s24 + $0x1c0] sm:$0xff] %v194_v56  ;;  %v196_v58 = vld [vmem:[%s909_s29 + $0x1d0] sm:$0xff]  ;;  %v197_v59 = vld [vmem:[%s909_s29 + $0x1d8] sm:$0xff]  ;;  %395 = vst [vmem:[%s918_s24 + $0x1c8] sm:$0xff] %v195_v57 }
  0x56   : > { %396 = vst [vmem:[%s918_s24 + $0x1d0] sm:$0xff] %v196_v58  ;;  %397 = vst [vmem:[%s918_s24 + $0x1d8] sm:$0xff] %v197_v59  ;;  %v198_v60 = vld [vmem:[%s909_s29 + $0x1e0] sm:$0xff]  ;;  %v199_v61 = vld [vmem:[%s909_s29 + $0x1e8] sm:$0xff] }
  0x57   : > { %v200_v62 = vld [vmem:[%s909_s29 + $0x1f0] sm:$0xff]  ;;  %398 = vst [vmem:[%s918_s24 + $0x1e0] sm:$0xff] %v198_v60  ;;  %399 = vst [vmem:[%s918_s24 + $0x1e8] sm:$0xff] %v199_v61  ;;  %v201_v63 = vld [vmem:[%s909_s29 + $0x1f8] sm:$0xff] }
  0x58   : > { %400 = vst [vmem:[%s918_s24 + $0x1f0] sm:$0xff] %v200_v62  ;;  %v202_v0 = vld [vmem:[%s909_s29 + $0x200] sm:$0xff]  ;;  %v203_v1 = vld [vmem:[%s909_s29 + $0x208] sm:$0xff]  ;;  %401 = vst [vmem:[%s918_s24 + $0x1f8] sm:$0xff] %v201_v63 }
  0x59   : > { %402 = vst [vmem:[%s918_s24 + $0x200] sm:$0xff] %v202_v0  ;;  %403 = vst [vmem:[%s918_s24 + $0x208] sm:$0xff] %v203_v1  ;;  %v204_v2 = vld [vmem:[%s909_s29 + $0x210] sm:$0xff]  ;;  %v205_v3 = vld [vmem:[%s909_s29 + $0x218] sm:$0xff] }
  0x5a   : > { %v206_v4 = vld [vmem:[%s909_s29 + $0x220] sm:$0xff]  ;;  %404 = vst [vmem:[%s918_s24 + $0x210] sm:$0xff] %v204_v2  ;;  %405 = vst [vmem:[%s918_s24 + $0x218] sm:$0xff] %v205_v3  ;;  %v207_v5 = vld [vmem:[%s909_s29 + $0x228] sm:$0xff] }
  0x5b   : > { %406 = vst [vmem:[%s918_s24 + $0x220] sm:$0xff] %v206_v4  ;;  %v208_v6 = vld [vmem:[%s909_s29 + $0x230] sm:$0xff]  ;;  %v209_v7 = vld [vmem:[%s909_s29 + $0x238] sm:$0xff]  ;;  %407 = vst [vmem:[%s918_s24 + $0x228] sm:$0xff] %v207_v5 }
  0x5c   : > { %408 = vst [vmem:[%s918_s24 + $0x230] sm:$0xff] %v208_v6  ;;  %409 = vst [vmem:[%s918_s24 + $0x238] sm:$0xff] %v209_v7  ;;  %v210_v8 = vld [vmem:[%s909_s29 + $0x240] sm:$0xff]  ;;  %v211_v9 = vld [vmem:[%s909_s29 + $0x248] sm:$0xff] }
  0x5d   : > { %v212_v10 = vld [vmem:[%s909_s29 + $0x250] sm:$0xff]  ;;  %410 = vst [vmem:[%s918_s24 + $0x240] sm:$0xff] %v210_v8  ;;  %411 = vst [vmem:[%s918_s24 + $0x248] sm:$0xff] %v211_v9  ;;  %v213_v11 = vld [vmem:[%s909_s29 + $0x258] sm:$0xff] }
  0x5e   : > { %412 = vst [vmem:[%s918_s24 + $0x250] sm:$0xff] %v212_v10  ;;  %v214_v12 = vld [vmem:[%s909_s29 + $0x260] sm:$0xff]  ;;  %v215_v13 = vld [vmem:[%s909_s29 + $0x268] sm:$0xff]  ;;  %413 = vst [vmem:[%s918_s24 + $0x258] sm:$0xff] %v213_v11 }
  0x5f   : > { %414 = vst [vmem:[%s918_s24 + $0x260] sm:$0xff] %v214_v12  ;;  %415 = vst [vmem:[%s918_s24 + $0x268] sm:$0xff] %v215_v13  ;;  %v216_v14 = vld [vmem:[%s909_s29 + $0x270] sm:$0xff]  ;;  %v217_v15 = vld [vmem:[%s909_s29 + $0x278] sm:$0xff] }
  0x60   : > { %v218_v16 = vld [vmem:[%s909_s29 + $0x280] sm:$0xff]  ;;  %416 = vst [vmem:[%s918_s24 + $0x270] sm:$0xff] %v216_v14  ;;  %417 = vst [vmem:[%s918_s24 + $0x278] sm:$0xff] %v217_v15  ;;  %v219_v17 = vld [vmem:[%s909_s29 + $0x288] sm:$0xff] }
  0x61   : > { %418 = vst [vmem:[%s918_s24 + $0x280] sm:$0xff] %v218_v16  ;;  %v220_v18 = vld [vmem:[%s909_s29 + $0x290] sm:$0xff]  ;;  %v221_v19 = vld [vmem:[%s909_s29 + $0x298] sm:$0xff]  ;;  %419 = vst [vmem:[%s918_s24 + $0x288] sm:$0xff] %v219_v17 }
  0x62   : > { %420 = vst [vmem:[%s918_s24 + $0x290] sm:$0xff] %v220_v18  ;;  %421 = vst [vmem:[%s918_s24 + $0x298] sm:$0xff] %v221_v19  ;;  %v222_v20 = vld [vmem:[%s909_s29 + $0x2a0] sm:$0xff]  ;;  %v223_v21 = vld [vmem:[%s909_s29 + $0x2a8] sm:$0xff] }
  0x63   : > { %v224_v22 = vld [vmem:[%s909_s29 + $0x2b0] sm:$0xff]  ;;  %422 = vst [vmem:[%s918_s24 + $0x2a0] sm:$0xff] %v222_v20  ;;  %423 = vst [vmem:[%s918_s24 + $0x2a8] sm:$0xff] %v223_v21  ;;  %v225_v23 = vld [vmem:[%s909_s29 + $0x2b8] sm:$0xff] }
  0x64   : > { %424 = vst [vmem:[%s918_s24 + $0x2b0] sm:$0xff] %v224_v22  ;;  %v226_v24 = vld [vmem:[%s909_s29 + $0x2c0] sm:$0xff]  ;;  %v227_v25 = vld [vmem:[%s909_s29 + $0x2c8] sm:$0xff]  ;;  %425 = vst [vmem:[%s918_s24 + $0x2b8] sm:$0xff] %v225_v23 }
  0x65   : > { %426 = vst [vmem:[%s918_s24 + $0x2c0] sm:$0xff] %v226_v24  ;;  %427 = vst [vmem:[%s918_s24 + $0x2c8] sm:$0xff] %v227_v25  ;;  %v228_v26 = vld [vmem:[%s909_s29 + $0x2d0] sm:$0xff]  ;;  %v229_v27 = vld [vmem:[%s909_s29 + $0x2d8] sm:$0xff] }
  0x66   : > { %v230_v28 = vld [vmem:[%s909_s29 + $0x2e0] sm:$0xff]  ;;  %428 = vst [vmem:[%s918_s24 + $0x2d0] sm:$0xff] %v228_v26  ;;  %429 = vst [vmem:[%s918_s24 + $0x2d8] sm:$0xff] %v229_v27  ;;  %v231_v29 = vld [vmem:[%s909_s29 + $0x2e8] sm:$0xff] }
  0x67   : > { %430 = vst [vmem:[%s918_s24 + $0x2e0] sm:$0xff] %v230_v28  ;;  %v232_v30 = vld [vmem:[%s909_s29 + $0x2f0] sm:$0xff]  ;;  %v233_v31 = vld [vmem:[%s909_s29 + $0x2f8] sm:$0xff]  ;;  %431 = vst [vmem:[%s918_s24 + $0x2e8] sm:$0xff] %v231_v29 }
  0x68   : > { %432 = vst [vmem:[%s918_s24 + $0x2f0] sm:$0xff] %v232_v30  ;;  %433 = vst [vmem:[%s918_s24 + $0x2f8] sm:$0xff] %v233_v31  ;;  %v234_v32 = vld [vmem:[%s909_s29 + $0x300] sm:$0xff]  ;;  %v235_v33 = vld [vmem:[%s909_s29 + $0x308] sm:$0xff] }
  0x69   : > { %v236_v34 = vld [vmem:[%s909_s29 + $0x310] sm:$0xff]  ;;  %434 = vst [vmem:[%s918_s24 + $0x300] sm:$0xff] %v234_v32  ;;  %435 = vst [vmem:[%s918_s24 + $0x308] sm:$0xff] %v235_v33  ;;  %v237_v35 = vld [vmem:[%s909_s29 + $0x318] sm:$0xff] }
  0x6a   : > { %436 = vst [vmem:[%s918_s24 + $0x310] sm:$0xff] %v236_v34  ;;  %v238_v36 = vld [vmem:[%s909_s29 + $0x320] sm:$0xff]  ;;  %v239_v37 = vld [vmem:[%s909_s29 + $0x328] sm:$0xff]  ;;  %437 = vst [vmem:[%s918_s24 + $0x318] sm:$0xff] %v237_v35 }
  0x6b   : > { %438 = vst [vmem:[%s918_s24 + $0x320] sm:$0xff] %v238_v36  ;;  %439 = vst [vmem:[%s918_s24 + $0x328] sm:$0xff] %v239_v37  ;;  %v240_v38 = vld [vmem:[%s909_s29 + $0x330] sm:$0xff]  ;;  %v241_v39 = vld [vmem:[%s909_s29 + $0x338] sm:$0xff] }
  0x6c   : > { %v242_v40 = vld [vmem:[%s909_s29 + $0x340] sm:$0xff]  ;;  %440 = vst [vmem:[%s918_s24 + $0x330] sm:$0xff] %v240_v38  ;;  %441 = vst [vmem:[%s918_s24 + $0x338] sm:$0xff] %v241_v39  ;;  %v243_v41 = vld [vmem:[%s909_s29 + $0x348] sm:$0xff] }
  0x6d   : > { %442 = vst [vmem:[%s918_s24 + $0x340] sm:$0xff] %v242_v40  ;;  %v244_v42 = vld [vmem:[%s909_s29 + $0x350] sm:$0xff]  ;;  %v245_v43 = vld [vmem:[%s909_s29 + $0x358] sm:$0xff]  ;;  %443 = vst [vmem:[%s918_s24 + $0x348] sm:$0xff] %v243_v41 }
  0x6e   : > { %444 = vst [vmem:[%s918_s24 + $0x350] sm:$0xff] %v244_v42  ;;  %445 = vst [vmem:[%s918_s24 + $0x358] sm:$0xff] %v245_v43  ;;  %v246_v44 = vld [vmem:[%s909_s29 + $0x360] sm:$0xff]  ;;  %v247_v45 = vld [vmem:[%s909_s29 + $0x368] sm:$0xff] }
  0x6f   : > { %v248_v46 = vld [vmem:[%s909_s29 + $0x370] sm:$0xff]  ;;  %446 = vst [vmem:[%s918_s24 + $0x360] sm:$0xff] %v246_v44  ;;  %447 = vst [vmem:[%s918_s24 + $0x368] sm:$0xff] %v247_v45  ;;  %v249_v47 = vld [vmem:[%s909_s29 + $0x378] sm:$0xff] }
  0x70   : > { %448 = vst [vmem:[%s918_s24 + $0x370] sm:$0xff] %v248_v46  ;;  %v250_v48 = vld [vmem:[%s909_s29 + $0x380] sm:$0xff]  ;;  %v251_v49 = vld [vmem:[%s909_s29 + $0x388] sm:$0xff]  ;;  %449 = vst [vmem:[%s918_s24 + $0x378] sm:$0xff] %v249_v47 }
  0x71   : > { %450 = vst [vmem:[%s918_s24 + $0x380] sm:$0xff] %v250_v48  ;;  %451 = vst [vmem:[%s918_s24 + $0x388] sm:$0xff] %v251_v49  ;;  %v252_v50 = vld [vmem:[%s909_s29 + $0x390] sm:$0xff]  ;;  %v253_v51 = vld [vmem:[%s909_s29 + $0x398] sm:$0xff] }
  0x72   : > { %v254_v52 = vld [vmem:[%s909_s29 + $0x3a0] sm:$0xff]  ;;  %452 = vst [vmem:[%s918_s24 + $0x390] sm:$0xff] %v252_v50  ;;  %453 = vst [vmem:[%s918_s24 + $0x398] sm:$0xff] %v253_v51  ;;  %v255_v53 = vld [vmem:[%s909_s29 + $0x3a8] sm:$0xff] }
  0x73   : > { %454 = vst [vmem:[%s918_s24 + $0x3a0] sm:$0xff] %v254_v52  ;;  %v256_v54 = vld [vmem:[%s909_s29 + $0x3b0] sm:$0xff]  ;;  %v257_v55 = vld [vmem:[%s909_s29 + $0x3b8] sm:$0xff]  ;;  %455 = vst [vmem:[%s918_s24 + $0x3a8] sm:$0xff] %v255_v53 }
  0x74   : > { %456 = vst [vmem:[%s918_s24 + $0x3b0] sm:$0xff] %v256_v54  ;;  %457 = vst [vmem:[%s918_s24 + $0x3b8] sm:$0xff] %v257_v55  ;;  %v258_v56 = vld [vmem:[%s909_s29 + $0x3c0] sm:$0xff]  ;;  %v259_v57 = vld [vmem:[%s909_s29 + $0x3c8] sm:$0xff] }
  0x75   : > { %v260_v58 = vld [vmem:[%s909_s29 + $0x3d0] sm:$0xff]  ;;  %458 = vst [vmem:[%s918_s24 + $0x3c0] sm:$0xff] %v258_v56  ;;  %459 = vst [vmem:[%s918_s24 + $0x3c8] sm:$0xff] %v259_v57  ;;  %v261_v59 = vld [vmem:[%s909_s29 + $0x3d8] sm:$0xff] }
  0x76   : > { %460 = vst [vmem:[%s918_s24 + $0x3d0] sm:$0xff] %v260_v58  ;;  %v262_v60 = vld [vmem:[%s909_s29 + $0x3e0] sm:$0xff]  ;;  %v263_v61 = vld [vmem:[%s909_s29 + $0x3e8] sm:$0xff]  ;;  %461 = vst [vmem:[%s918_s24 + $0x3d8] sm:$0xff] %v261_v59 }
  0x77   : > { %462 = vst [vmem:[%s918_s24 + $0x3e0] sm:$0xff] %v262_v60  ;;  %463 = vst [vmem:[%s918_s24 + $0x3e8] sm:$0xff] %v263_v61  ;;  %v264_v62 = vld [vmem:[%s909_s29 + $0x3f0] sm:$0xff]  ;;  %v265_v63 = vld [vmem:[%s909_s29 + $0x3f8] sm:$0xff] }
  0x78   : > { %v266_v0 = vld [vmem:[%s909_s29 + $0x400] sm:$0xff]  ;;  %464 = vst [vmem:[%s918_s24 + $0x3f0] sm:$0xff] %v264_v62  ;;  %465 = vst [vmem:[%s918_s24 + $0x3f8] sm:$0xff] %v265_v63  ;;  %v267_v1 = vld [vmem:[%s909_s29 + $0x408] sm:$0xff] }
  0x79   : > { %466 = vst [vmem:[%s918_s24 + $0x400] sm:$0xff] %v266_v0  ;;  %v268_v2 = vld [vmem:[%s909_s29 + $0x410] sm:$0xff]  ;;  %v269_v3 = vld [vmem:[%s909_s29 + $0x418] sm:$0xff]  ;;  %467 = vst [vmem:[%s918_s24 + $0x408] sm:$0xff] %v267_v1 }
  0x7a   : > { %468 = vst [vmem:[%s918_s24 + $0x410] sm:$0xff] %v268_v2  ;;  %469 = vst [vmem:[%s918_s24 + $0x418] sm:$0xff] %v269_v3  ;;  %v270_v4 = vld [vmem:[%s909_s29 + $0x420] sm:$0xff]  ;;  %v271_v5 = vld [vmem:[%s909_s29 + $0x428] sm:$0xff] }
  0x7b   : > { %v272_v6 = vld [vmem:[%s909_s29 + $0x430] sm:$0xff]  ;;  %470 = vst [vmem:[%s918_s24 + $0x420] sm:$0xff] %v270_v4  ;;  %471 = vst [vmem:[%s918_s24 + $0x428] sm:$0xff] %v271_v5  ;;  %v273_v7 = vld [vmem:[%s909_s29 + $0x438] sm:$0xff] }
  0x7c   : > { %472 = vst [vmem:[%s918_s24 + $0x430] sm:$0xff] %v272_v6  ;;  %v274_v8 = vld [vmem:[%s909_s29 + $0x440] sm:$0xff]  ;;  %v275_v9 = vld [vmem:[%s909_s29 + $0x448] sm:$0xff]  ;;  %473 = vst [vmem:[%s918_s24 + $0x438] sm:$0xff] %v273_v7 }
  0x7d   : > { %474 = vst [vmem:[%s918_s24 + $0x440] sm:$0xff] %v274_v8  ;;  %475 = vst [vmem:[%s918_s24 + $0x448] sm:$0xff] %v275_v9  ;;  %v276_v10 = vld [vmem:[%s909_s29 + $0x450] sm:$0xff]  ;;  %v277_v11 = vld [vmem:[%s909_s29 + $0x458] sm:$0xff] }
  0x7e   : > { %v278_v12 = vld [vmem:[%s909_s29 + $0x460] sm:$0xff]  ;;  %476 = vst [vmem:[%s918_s24 + $0x450] sm:$0xff] %v276_v10  ;;  %477 = vst [vmem:[%s918_s24 + $0x458] sm:$0xff] %v277_v11  ;;  %v279_v13 = vld [vmem:[%s909_s29 + $0x468] sm:$0xff] }
  0x7f   : > { %478 = vst [vmem:[%s918_s24 + $0x460] sm:$0xff] %v278_v12  ;;  %v280_v14 = vld [vmem:[%s909_s29 + $0x470] sm:$0xff]  ;;  %v281_v15 = vld [vmem:[%s909_s29 + $0x478] sm:$0xff]  ;;  %479 = vst [vmem:[%s918_s24 + $0x468] sm:$0xff] %v279_v13 }
  0x80   : > { %480 = vst [vmem:[%s918_s24 + $0x470] sm:$0xff] %v280_v14  ;;  %481 = vst [vmem:[%s918_s24 + $0x478] sm:$0xff] %v281_v15  ;;  %v282_v16 = vld [vmem:[%s909_s29 + $0x480] sm:$0xff]  ;;  %v283_v17 = vld [vmem:[%s909_s29 + $0x488] sm:$0xff] }
  0x81   : > { %v284_v18 = vld [vmem:[%s909_s29 + $0x490] sm:$0xff]  ;;  %482 = vst [vmem:[%s918_s24 + $0x480] sm:$0xff] %v282_v16  ;;  %483 = vst [vmem:[%s918_s24 + $0x488] sm:$0xff] %v283_v17  ;;  %v285_v19 = vld [vmem:[%s909_s29 + $0x498] sm:$0xff] }
  0x82   : > { %484 = vst [vmem:[%s918_s24 + $0x490] sm:$0xff] %v284_v18  ;;  %v286_v20 = vld [vmem:[%s909_s29 + $0x4a0] sm:$0xff]  ;;  %v287_v21 = vld [vmem:[%s909_s29 + $0x4a8] sm:$0xff]  ;;  %485 = vst [vmem:[%s918_s24 + $0x498] sm:$0xff] %v285_v19 }
  0x83   : > { %486 = vst [vmem:[%s918_s24 + $0x4a0] sm:$0xff] %v286_v20  ;;  %487 = vst [vmem:[%s918_s24 + $0x4a8] sm:$0xff] %v287_v21  ;;  %v288_v22 = vld [vmem:[%s909_s29 + $0x4b0] sm:$0xff]  ;;  %v289_v23 = vld [vmem:[%s909_s29 + $0x4b8] sm:$0xff] }
  0x84   : > { %v290_v24 = vld [vmem:[%s909_s29 + $0x4c0] sm:$0xff]  ;;  %488 = vst [vmem:[%s918_s24 + $0x4b0] sm:$0xff] %v288_v22  ;;  %489 = vst [vmem:[%s918_s24 + $0x4b8] sm:$0xff] %v289_v23  ;;  %v291_v25 = vld [vmem:[%s909_s29 + $0x4c8] sm:$0xff] }
  0x85   : > { %490 = vst [vmem:[%s918_s24 + $0x4c0] sm:$0xff] %v290_v24  ;;  %v292_v26 = vld [vmem:[%s909_s29 + $0x4d0] sm:$0xff]  ;;  %v293_v27 = vld [vmem:[%s909_s29 + $0x4d8] sm:$0xff]  ;;  %491 = vst [vmem:[%s918_s24 + $0x4c8] sm:$0xff] %v291_v25 }
  0x86   : > { %492 = vst [vmem:[%s918_s24 + $0x4d0] sm:$0xff] %v292_v26  ;;  %493 = vst [vmem:[%s918_s24 + $0x4d8] sm:$0xff] %v293_v27  ;;  %v294_v28 = vld [vmem:[%s909_s29 + $0x4e0] sm:$0xff]  ;;  %v295_v29 = vld [vmem:[%s909_s29 + $0x4e8] sm:$0xff] }
  0x87   : > { %v296_v30 = vld [vmem:[%s909_s29 + $0x4f0] sm:$0xff]  ;;  %494 = vst [vmem:[%s918_s24 + $0x4e0] sm:$0xff] %v294_v28  ;;  %495 = vst [vmem:[%s918_s24 + $0x4e8] sm:$0xff] %v295_v29  ;;  %v297_v31 = vld [vmem:[%s909_s29 + $0x4f8] sm:$0xff] }
  0x88   : > { %496 = vst [vmem:[%s918_s24 + $0x4f0] sm:$0xff] %v296_v30  ;;  %v298_v32 = vld [vmem:[%s909_s29 + $0x500] sm:$0xff]  ;;  %v299_v33 = vld [vmem:[%s909_s29 + $0x508] sm:$0xff]  ;;  %497 = vst [vmem:[%s918_s24 + $0x4f8] sm:$0xff] %v297_v31 }
  0x89   : > { %498 = vst [vmem:[%s918_s24 + $0x500] sm:$0xff] %v298_v32  ;;  %499 = vst [vmem:[%s918_s24 + $0x508] sm:$0xff] %v299_v33  ;;  %v300_v34 = vld [vmem:[%s909_s29 + $0x510] sm:$0xff]  ;;  %v301_v35 = vld [vmem:[%s909_s29 + $0x518] sm:$0xff] }
  0x8a   : > { %v302_v36 = vld [vmem:[%s909_s29 + $0x520] sm:$0xff]  ;;  %500 = vst [vmem:[%s918_s24 + $0x510] sm:$0xff] %v300_v34  ;;  %501 = vst [vmem:[%s918_s24 + $0x518] sm:$0xff] %v301_v35  ;;  %v303_v37 = vld [vmem:[%s909_s29 + $0x528] sm:$0xff] }
  0x8b   : > { %502 = vst [vmem:[%s918_s24 + $0x520] sm:$0xff] %v302_v36  ;;  %v304_v38 = vld [vmem:[%s909_s29 + $0x530] sm:$0xff]  ;;  %v305_v39 = vld [vmem:[%s909_s29 + $0x538] sm:$0xff]  ;;  %503 = vst [vmem:[%s918_s24 + $0x528] sm:$0xff] %v303_v37 }
  0x8c   : > { %504 = vst [vmem:[%s918_s24 + $0x530] sm:$0xff] %v304_v38  ;;  %505 = vst [vmem:[%s918_s24 + $0x538] sm:$0xff] %v305_v39  ;;  %v306_v40 = vld [vmem:[%s909_s29 + $0x540] sm:$0xff]  ;;  %v307_v41 = vld [vmem:[%s909_s29 + $0x548] sm:$0xff] }
  0x8d   : > { %v308_v42 = vld [vmem:[%s909_s29 + $0x550] sm:$0xff]  ;;  %506 = vst [vmem:[%s918_s24 + $0x540] sm:$0xff] %v306_v40  ;;  %507 = vst [vmem:[%s918_s24 + $0x548] sm:$0xff] %v307_v41  ;;  %v309_v43 = vld [vmem:[%s909_s29 + $0x558] sm:$0xff] }
  0x8e   : > { %508 = vst [vmem:[%s918_s24 + $0x550] sm:$0xff] %v308_v42  ;;  %v310_v44 = vld [vmem:[%s909_s29 + $0x560] sm:$0xff]  ;;  %v311_v45 = vld [vmem:[%s909_s29 + $0x568] sm:$0xff]  ;;  %509 = vst [vmem:[%s918_s24 + $0x558] sm:$0xff] %v309_v43 }
  0x8f   : > { %510 = vst [vmem:[%s918_s24 + $0x560] sm:$0xff] %v310_v44  ;;  %511 = vst [vmem:[%s918_s24 + $0x568] sm:$0xff] %v311_v45  ;;  %v312_v46 = vld [vmem:[%s909_s29 + $0x570] sm:$0xff]  ;;  %v313_v47 = vld [vmem:[%s909_s29 + $0x578] sm:$0xff] }
  0x90   : > { %v314_v48 = vld [vmem:[%s909_s29 + $0x580] sm:$0xff]  ;;  %512 = vst [vmem:[%s918_s24 + $0x570] sm:$0xff] %v312_v46  ;;  %513 = vst [vmem:[%s918_s24 + $0x578] sm:$0xff] %v313_v47  ;;  %v315_v49 = vld [vmem:[%s909_s29 + $0x588] sm:$0xff] }
  0x91   : > { %514 = vst [vmem:[%s918_s24 + $0x580] sm:$0xff] %v314_v48  ;;  %v316_v50 = vld [vmem:[%s909_s29 + $0x590] sm:$0xff]  ;;  %v317_v51 = vld [vmem:[%s909_s29 + $0x598] sm:$0xff]  ;;  %515 = vst [vmem:[%s918_s24 + $0x588] sm:$0xff] %v315_v49 }
  0x92   : > { %516 = vst [vmem:[%s918_s24 + $0x590] sm:$0xff] %v316_v50  ;;  %517 = vst [vmem:[%s918_s24 + $0x598] sm:$0xff] %v317_v51  ;;  %v318_v52 = vld [vmem:[%s909_s29 + $0x5a0] sm:$0xff]  ;;  %v319_v53 = vld [vmem:[%s909_s29 + $0x5a8] sm:$0xff] }
  0x93   : > { %v320_v54 = vld [vmem:[%s909_s29 + $0x5b0] sm:$0xff]  ;;  %518 = vst [vmem:[%s918_s24 + $0x5a0] sm:$0xff] %v318_v52  ;;  %519 = vst [vmem:[%s918_s24 + $0x5a8] sm:$0xff] %v319_v53  ;;  %v321_v55 = vld [vmem:[%s909_s29 + $0x5b8] sm:$0xff] }
  0x94   : > { %520 = vst [vmem:[%s918_s24 + $0x5b0] sm:$0xff] %v320_v54  ;;  %v322_v56 = vld [vmem:[%s909_s29 + $0x5c0] sm:$0xff]  ;;  %v323_v57 = vld [vmem:[%s909_s29 + $0x5c8] sm:$0xff]  ;;  %521 = vst [vmem:[%s918_s24 + $0x5b8] sm:$0xff] %v321_v55 }
  0x95   : > { %522 = vst [vmem:[%s918_s24 + $0x5c0] sm:$0xff] %v322_v56  ;;  %523 = vst [vmem:[%s918_s24 + $0x5c8] sm:$0xff] %v323_v57  ;;  %v324_v58 = vld [vmem:[%s909_s29 + $0x5d0] sm:$0xff]  ;;  %v325_v59 = vld [vmem:[%s909_s29 + $0x5d8] sm:$0xff] }
  0x96   : > { %v326_v60 = vld [vmem:[%s909_s29 + $0x5e0] sm:$0xff]  ;;  %524 = vst [vmem:[%s918_s24 + $0x5d0] sm:$0xff] %v324_v58  ;;  %525 = vst [vmem:[%s918_s24 + $0x5d8] sm:$0xff] %v325_v59  ;;  %v327_v61 = vld [vmem:[%s909_s29 + $0x5e8] sm:$0xff] }
  0x97   : > { %526 = vst [vmem:[%s918_s24 + $0x5e0] sm:$0xff] %v326_v60  ;;  %v328_v62 = vld [vmem:[%s909_s29 + $0x5f0] sm:$0xff]  ;;  %v329_v63 = vld [vmem:[%s909_s29 + $0x5f8] sm:$0xff]  ;;  %527 = vst [vmem:[%s918_s24 + $0x5e8] sm:$0xff] %v327_v61 }
  0x98   : > { %528 = vst [vmem:[%s918_s24 + $0x5f0] sm:$0xff] %v328_v62  ;;  %529 = vst [vmem:[%s918_s24 + $0x5f8] sm:$0xff] %v329_v63  ;;  %v330_v0 = vld [vmem:[%s909_s29 + $0x600] sm:$0xff]  ;;  %v331_v1 = vld [vmem:[%s909_s29 + $0x608] sm:$0xff] }
  0x99   : > { %v332_v2 = vld [vmem:[%s909_s29 + $0x610] sm:$0xff]  ;;  %530 = vst [vmem:[%s918_s24 + $0x600] sm:$0xff] %v330_v0  ;;  %531 = vst [vmem:[%s918_s24 + $0x608] sm:$0xff] %v331_v1  ;;  %v333_v3 = vld [vmem:[%s909_s29 + $0x618] sm:$0xff] }
  0x9a   : > { %532 = vst [vmem:[%s918_s24 + $0x610] sm:$0xff] %v332_v2  ;;  %v334_v4 = vld [vmem:[%s909_s29 + $0x620] sm:$0xff]  ;;  %v335_v5 = vld [vmem:[%s909_s29 + $0x628] sm:$0xff]  ;;  %533 = vst [vmem:[%s918_s24 + $0x618] sm:$0xff] %v333_v3 }
  0x9b   : > { %534 = vst [vmem:[%s918_s24 + $0x620] sm:$0xff] %v334_v4  ;;  %535 = vst [vmem:[%s918_s24 + $0x628] sm:$0xff] %v335_v5  ;;  %v336_v6 = vld [vmem:[%s909_s29 + $0x630] sm:$0xff]  ;;  %v337_v7 = vld [vmem:[%s909_s29 + $0x638] sm:$0xff] }
  0x9c   : > { %536 = vst [vmem:[%s918_s24 + $0x630] sm:$0xff] %v336_v6  ;;  %537 = vst [vmem:[%s918_s24 + $0x638] sm:$0xff] %v337_v7 }
  0x9d   : > { %737 = shalt.err (!%p734_p1)
}
  0x9e   : > { %s738_s11 = scalar_lea.hbm %s1317_s28, 25600  ;;  %s742_s19 = scalar_lea.hbm %s1368_s1, 76800 }
  0x9f   : > { %p739_p3 = scmp.ne.s32.totalorder %s1317_s28, %s738_s11  ;;  %p743_p0 = scmp.lt.u32.totalorder %s1317_s28, %s1368_s1 }
  0xa0   : > { %p744_p2 = scmp.lt.u32.totalorder %s742_s19, %s738_s11  ;;  %p746_p6 = scmp.lt.u32.totalorder %s738_s11, %s1317_s28 }
  0xa1   : > { %p740_p4 = pnand %p739_p3, %p1374_p10 }
  0xa2   : > { %p745_p7 = por %p744_p2, %p743_p0 }
  0xa3   : > { %p741_p5 = pneg %p740_p4 }
  0xa4   : > { %p747_p11 = por %p746_p6, %p745_p7 }
  0xa6   : > { %p748_p12 = pnand %p747_p11, %p741_p5 }
  0xa8   : > { %751 = shalt.err (!%p748_p12)
}
  0xa9   : > { %s796_s23 = smov 1024   ;;  %s797_s26 = smov 64  }
  0xaa   : > { %646 = dma.vmem_to_hbm [thread:$0]  (%p1374_p10), %s1306_s25, 25600, %s1317_s28, %s539_s30, %s796_s23, %s796_s23, %s797_s26  }
  0xab PF: > { %p657_p8 = scmp.ge.s32.totalorder %s790_s9, 2  ;;  %s568_s29 = sand.u32 1, %s778_s6  }
  0xac   : > { %p1375_p9 = scmp.ne.s32.totalorder %s1372_s18, 0  ;;  %s569_s24 = scalar_lea.sflag [#allocation4], %s568_s29 }
  0xae   : > { %p653_p13 = pnand %p657_p8, %p1375_p9 }
  0xb0   : > { %773 = dma.done.wait (!%p653_p13), %s569_s24, 25600  }
  0xb1   : > { %775 = vsyncadd (!%p653_p13), %s569_s24, 4294941696  ;;  %p14_p1 = scmp.ge.s32.totalorder %s833_s12, 5   ;;  %s1376_s6 = smov %s782_s7 }
  0xb2   : > { %s1377_s7 = smov %s786_s8  ;;  %s1378_s8 = smov %s845_s15 }
  0xb3   : > { %s1379_s9 = smov %s833_s12  ;;  %16 = sbr.rel (!%p14_p1) target bundleno = 5 (0x5), region = 69 }
  0xba   :  { %574 = vsyncpa [#allocation3], 1 }
  0xbb   :  { %576 = vsyncpa [#allocation3 + $0x1], 1 }
  0xbc   :  { %577 = vsyncpa [#allocation4], 1 }
  0xbd   :  { %579 = vsyncpa [#allocation4 + $0x1], 1 }

</bundles_post_ra>
